<compile_context>
chip_gen: v6e
topology: v6e:2x2x1
jax: 0.10.0
libtpu: 0.0.40
codegen_flags: <defaults>
</compile_context>

<pallas_src>
import functools

import jax
import jax.numpy as jnp
from jax.experimental import pallas as pl
from jax.experimental.pallas import tpu as pltpu


def _cdiv(a, b):
    return (a + b - 1) // b


def _round_up(x, m):
    return ((x + m - 1) // m) * m


def _sublane(itemsize):
    # rows per vreg sublane-pack: 8 for f32, 16 for bf16, 32 for int8/fp8
    return max(8, 32 // itemsize)


def _vmem_plan():
    """(working_budget_bytes, vmem_limit_bytes), per TPU generation."""
    try:
        cap = getattr(pltpu.get_tpu_info(), "vmem_capacity_bytes", None)
    except Exception:
        cap = None
    if cap is not None and cap >= 96 * 1024 * 1024:
        # v5e / v6e (128 MiB physical VMEM): big lane-dense tiles; kernel is HBM-bound.
        return 32 * 1024 * 1024, 100 * 1024 * 1024
    # v7x (64 MiB per TC) or unknown / interpret environment: stay conservative.
    return 12 * 1024 * 1024, 48 * 1024 * 1024


def _choose_tiles(n_rows, vocab, itemsize, budget_bytes):
    """Pick (row_tile, vocab_tile, sublane) for a double-buffered logits stream."""
    sub = _sublane(itemsize)
    row_pad = _round_up(max(n_rows, 1), sub)

    # Vocab tile: whole vocab if a minimal (sub-row) double-buffered slab fits the budget,
    # else a 128-multiple -- preferring one that divides V so no per-tile pad mask is needed.
    if 2 * sub * vocab * itemsize <= budget_bytes:
        tv = vocab
    else:
        cap = max(128, (budget_bytes // (2 * sub * itemsize)) // 128 * 128)
        tv = cap
        cand = cap
        while cand >= max(128, cap // 2):
            if vocab % cand == 0:
                tv = cand
                break
            cand -= 128

    # Row tile: double-buffered logits plus the lane-padded (tr,1) side buffers
    # (3 f32 accumulators + double-buffered out + double-buffered int32 targets ~ 7*512 B/row).
    per_row = 2 * tv * itemsize + 8 * 512
    tr = max(sub, (budget_bytes // per_row) // sub * sub)
    tr = min(tr, row_pad)
    # Keep >= 2 row tiles so both v7x TensorCores get work under the "parallel" row axis.
    if row_pad > sub:
        tr = min(tr, max(sub, _round_up(_cdiv(n_rows, 2), sub)))
    return tr, tv, sub


def _ce_nll_kernel(pre_ref, tgt_ref, o_ref, m_acc, l_acc, p_acc, *,
                   n_rows, vocab, tile_v, n_v):
    """Online-LSE cross entropy; emits per-row NLL at the last vocab tile."""
    # All grid queries at the top level (interpret-mode safe); n_v is static.
    v = pl.program_id(1)
    r = pl.program_id(0)

    @pl.when(v == 0)
    def _init():
        m_acc[...] = jnp.full(m_acc.shape, -jnp.inf, m_acc.dtype)
        l_acc[...] = jnp.zeros(l_acc.shape, l_acc.dtype)
        p_acc[...] = jnp.zeros(p_acc.shape, p_acc.dtype)

    logits = pre_ref[...]                                  # native dtype; no full-tile upcast
    tgt = tgt_ref[...].astype(jnp.int32)                   # (TR, 1)
    TR, TV = logits.shape

    col_local = jax.lax.broadcasted_iota(jnp.int32, (TR, TV), 1)   # tile-local class index

    if vocab % tile_v != 0:                                # static: only if a tile can be partial
        rem = vocab - v * tile_v                           # valid columns in this tile
        logits = jax.lax.cond(                             # only the LAST tile pays the mask
            v == n_v - 1,
            lambda x: jnp.where(col_local < rem, x, jnp.array(-jnp.inf, x.dtype)),
            lambda x: x,
            logits)

    # Online log-sum-exp (flash-attention style rescale of the running sum).
    m_prev = m_acc[...]
    tile_max = jnp.max(logits, axis=-1, keepdims=True).astype(jnp.float32)
    m_new = jnp.maximum(m_prev, tile_max)
    l_acc[...] = (l_acc[...] * jnp.exp(m_prev - m_new)
                  + jnp.sum(jnp.exp(logits - m_new), axis=-1, keepdims=True))
    m_acc[...] = m_new

    # Picked target logit: tile-local compare, no one-hot f32 temporary.
    tgt_local = tgt - v * tile_v                           # (TR, 1)
    hit = col_local == tgt_local
    p_acc[...] += jnp.sum(jnp.where(hit, logits, jnp.zeros_like(logits)),
                          axis=-1, keepdims=True).astype(jnp.float32)

    @pl.when(v == n_v - 1)
    def _finalize():
        nll = m_acc[...] + jnp.log(l_acc[...]) - p_acc[...]          # (TR, 1)
        row = jax.lax.broadcasted_iota(jnp.int32, nll.shape, 0) + r * TR
        o_ref[...] = jnp.where(row < n_rows, nll, 0.0)               # zero padded rows


def cross_entropy_pallas(pre, real, trg_mask, *, tile_rows=None, tile_vocab=None,
                         vmem_budget_bytes=None):
    """pre: [B, L, V] float, real: [B, L, 1] int, trg_mask: [B, L, 1] -> scalar f32."""
    B, L, V = pre.shape
    N = B * L

    pre2 = pre.reshape(N, V)                       # native dtype: no upcast before the DMA
    tgt2 = real.reshape(N, 1).astype(jnp.int32)
    itemsize = pre2.dtype.itemsize

    budget, vmem_limit = _vmem_plan()
    if vmem_budget_bytes is not None:
        budget = vmem_budget_bytes
    tr, tv, sub = _choose_tiles(N, V, itemsize, budget)

    # Validate user overrides against the (8,128)/dtype tiling constraints.
    if tile_vocab is not None:
        if tile_vocab != V and tile_vocab % 128 != 0:
            raise ValueError("tile_vocab must equal the vocab size or be a multiple of 128")
        tv = tile_vocab
    if tile_rows is not None:
        if tile_rows % sub != 0:
            raise ValueError(f"tile_rows must be a multiple of {sub} for dtype {pre2.dtype}")
        tr = tile_rows

    n_r = _cdiv(N, tr)
    n_v = _cdiv(V, tv)
    r_pad = n_r * tr

    cost_est = pl.CostEstimate(
        flops=5 * N * V,
        transcendentals=N * V,
        bytes_accessed=N * V * itemsize + N * 4 + r_pad * 4,
    )

    nll = pl.pallas_call(
        functools.partial(_ce_nll_kernel, n_rows=N, vocab=V, tile_v=tv, n_v=n_v),
        out_shape=jax.ShapeDtypeStruct((r_pad, 1), jnp.float32),
        grid_spec=pltpu.PrefetchScalarGridSpec(
            num_scalar_prefetch=0,
            grid=(n_r, n_v),                                     # vocab (reduction) axis last
            in_specs=[
                pl.BlockSpec((tr, tv), lambda r, v: (r, v)),     # logits tile (streams HBM->VMEM)
                pl.BlockSpec((tr, 1), lambda r, v: (r, 0)),      # targets (tiny vs logits stream)
            ],
            out_specs=pl.BlockSpec((tr, 1), lambda r, v: (r, 0)),  # per-row NLL, resident over v
            scratch_shapes=[pltpu.VMEM((tr, 1), jnp.float32) for _ in range(3)],  # m, l, picked
        ),
        compiler_params=pltpu.CompilerParams(
            dimension_semantics=("parallel", "arbitrary"),       # rows shard across TCs on v7x
            vmem_limit_bytes=vmem_limit,
        ),
        cost_estimate=cost_est,
    )(pre2, tgt2)

    nll = nll[:N, 0].reshape(B, L)

    # Tiny final combine in plain JAX: per-example mean over seq, sum over batch, * mean(mask).
    # Targets equal to -100 follow PyTorch CrossEntropyLoss's ignore_index default.
    tgt_bl = real.reshape(B, L).astype(jnp.int32)
    valid = tgt_bl != -100
    denom = jnp.maximum(jnp.sum(valid, axis=1), 1).astype(jnp.float32)
    cost = jnp.sum(jnp.sum(nll * valid.astype(jnp.float32), axis=1) / denom)
    return cost * jnp.mean(trg_mask.astype(jnp.float32))


def _reference(pre, real, trg_mask):
    # Pure-JAX reference for the same semantics.
    logp = jax.nn.log_softmax(pre.astype(jnp.float32), axis=-1)        # [B, L, V]
    tgt = real[..., 0].astype(jnp.int32)                               # [B, L]
    nll = -jnp.take_along_axis(logp, tgt[..., None], axis=-1)[..., 0]  # [B, L]
    cost = jnp.sum(jnp.mean(nll, axis=-1))                             # sum over batch of per-example mean
    return cost * jnp.mean(trg_mask.astype(jnp.float32))


if __name__ == "__main__":
    key = jax.random.PRNGKey(0)
    k1, k2, k3, k4, k5, k6 = jax.random.split(key, 6)

    # Small shapes consistent with the module's [batch, seq, vocab] usage.
    B, L, V = 2, 8, 128
    pre = jax.random.normal(k1, (B, L, V), dtype=jnp.float32)
    real = jax.random.randint(k2, (B, L, 1), 0, V, dtype=jnp.int32)
    trg_mask = (jax.random.uniform(k3, (B, L, 1)) > 0.2).astype(jnp.float32)

    out = jax.block_until_ready(cross_entropy_pallas(pre, real, trg_mask))
    ref = _reference(pre, real, trg_mask)
    assert jnp.allclose(out, ref, rtol=1e-5, atol=1e-5), (out, ref)

    # Exercise the streaming online-LSE path: multiple vocab tiles, the cond-gated
    # partial-vocab mask (300 % 128 != 0), and padded rows (30 rows, 16-row tiles).
    B2, L2, V2 = 3, 10, 300
    pre_t = jax.random.normal(k4, (B2, L2, V2), dtype=jnp.float32)
    real_t = jax.random.randint(k5, (B2, L2, 1), 0, V2, dtype=jnp.int32)
    mask_t = (jax.random.uniform(k6, (B2, L2, 1)) > 0.5).astype(jnp.float32)

    out_t = jax.block_until_ready(
        cross_entropy_pallas(pre_t, real_t, mask_t, tile_rows=16, tile_vocab=128))
    ref_t = _reference(pre_t, real_t, mask_t)
    assert jnp.allclose(out_t, ref_t, rtol=1e-4, atol=1e-4), (out_t, ref_t)

    print("KERNEL_OK")
</pallas_src>

<mosaic_0001>
module attributes {stable_mosaic.version = 11 : i64} {
  func.func @_ce_nll_kernel(%arg0: i32, %arg1: i32, %arg2: memref<8x128xf32, #tpu.memory_space<vmem>>, %arg3: memref<8x1xi32, #tpu.memory_space<vmem>>, %arg4: memref<8x1xf32, #tpu.memory_space<vmem>>, %arg5: memref<8x1xf32, #tpu.memory_space<vmem>>, %arg6: memref<8x1xf32, #tpu.memory_space<vmem>>, %arg7: memref<8x1xf32, #tpu.memory_space<vmem>>) attributes {dimension_semantics = [#tpu.dimension_semantics<parallel>, #tpu.dimension_semantics<arbitrary>], iteration_bounds = array<i64: 2, 1>, scalar_prefetch = 0 : i64, scratch_operands = 3 : i64, tpu.core_type = #tpu.core_type<tc>, window_params = [{transform_indices = @transform_0, window_bounds = array<i64: 8, 128>}, {transform_indices = @transform_1, window_bounds = array<i64: 8, 1>}, {transform_indices = @transform_2, window_bounds = array<i64: 8, 1>}]} {
    %c0_i32 = arith.constant 0 : i32
    %0 = arith.cmpi eq, %arg1, %c0_i32 : i32
    %1 = arith.extui %0 : i1 to i32
    %c0_i32_0 = arith.constant 0 : i32
    %2 = arith.cmpi ne, %1, %c0_i32_0 : i32
    scf.if %2 {
      %cst_21 = arith.constant 0xFF800000 : f32
      %37 = vector.broadcast %cst_21 : f32 to vector<8x1xf32>
      %c0_22 = arith.constant 0 : index
      %c0_23 = arith.constant 0 : index
      %38 = vector.load %arg5[%c0_22, %c0_23] : memref<8x1xf32, #tpu.memory_space<vmem>>, vector<8x1xf32>
      tpu.vector_store %arg5[%c0_22, %c0_23], %37 {strides = array<i32>} : memref<8x1xf32, #tpu.memory_space<vmem>>, vector<8x1xf32>,
      %cst_24 = arith.constant 0.000000e+00 : f32
      %39 = vector.broadcast %cst_24 : f32 to vector<8x1xf32>
      %c0_25 = arith.constant 0 : index
      %c0_26 = arith.constant 0 : index
      %40 = vector.load %arg6[%c0_25, %c0_26] : memref<8x1xf32, #tpu.memory_space<vmem>>, vector<8x1xf32>
      tpu.vector_store %arg6[%c0_25, %c0_26], %39 {strides = array<i32>} : memref<8x1xf32, #tpu.memory_space<vmem>>, vector<8x1xf32>,
      %cst_27 = arith.constant 0.000000e+00 : f32
      %41 = vector.broadcast %cst_27 : f32 to vector<8x1xf32>
      %c0_28 = arith.constant 0 : index
      %c0_29 = arith.constant 0 : index
      %42 = vector.load %arg7[%c0_28, %c0_29] : memref<8x1xf32, #tpu.memory_space<vmem>>, vector<8x1xf32>
      tpu.vector_store %arg7[%c0_28, %c0_29], %41 {strides = array<i32>} : memref<8x1xf32, #tpu.memory_space<vmem>>, vector<8x1xf32>,
    } else {
    }
    %c0 = arith.constant 0 : index
    %c0_1 = arith.constant 0 : index
    %3 = vector.load %arg2[%c0, %c0_1] : memref<8x128xf32, #tpu.memory_space<vmem>>, vector<8x128xf32>
    %c0_2 = arith.constant 0 : index
    %c0_3 = arith.constant 0 : index
    %4 = vector.load %arg3[%c0_2, %c0_3] : memref<8x1xi32, #tpu.memory_space<vmem>>, vector<8x1xi32>
    %5 = tpu.iota {dimensions = array<i32: 1>} : vector<8x128xi32>
    %c0_4 = arith.constant 0 : index
    %c0_5 = arith.constant 0 : index
    %6 = vector.load %arg5[%c0_4, %c0_5] : memref<8x1xf32, #tpu.memory_space<vmem>>, vector<8x1xf32>
    %cst = arith.constant dense<0xFF800000> : vector<8xf32>
    %7 = vector.multi_reduction <maximumf>, %3, %cst [1] : vector<8x128xf32> to vector<8xf32>
    %8 = vector.shape_cast %7 : vector<8xf32> to vector<8x1xf32>
    %9 = arith.maximumf %6, %8 : vector<8x1xf32>
    %c0_6 = arith.constant 0 : index
    %c0_7 = arith.constant 0 : index
    %10 = vector.load %arg6[%c0_6, %c0_7] : memref<8x1xf32, #tpu.memory_space<vmem>>, vector<8x1xf32>
    %11 = arith.subf %6, %9 : vector<8x1xf32>
    %12 = math.exp %11 : vector<8x1xf32>
    %13 = arith.mulf %10, %12 : vector<8x1xf32>
    %14 = vector.broadcast %9 : vector<8x1xf32> to vector<8x128xf32>
    %15 = arith.subf %3, %14 : vector<8x128xf32>
    %16 = math.exp %15 : vector<8x128xf32>
    %cst_8 = arith.constant dense<0.000000e+00> : vector<8xf32>
    %17 = vector.multi_reduction <add>, %16, %cst_8 [1] : vector<8x128xf32> to vector<8xf32>
    %18 = vector.shape_cast %17 : vector<8xf32> to vector<8x1xf32>
    %19 = arith.addf %13, %18 : vector<8x1xf32>
    %c0_9 = arith.constant 0 : index
    %c0_10 = arith.constant 0 : index
    %20 = vector.load %arg6[%c0_9, %c0_10] : memref<8x1xf32, #tpu.memory_space<vmem>>, vector<8x1xf32>
    tpu.vector_store %arg6[%c0_9, %c0_10], %19 {strides = array<i32>} : memref<8x1xf32, #tpu.memory_space<vmem>>, vector<8x1xf32>,
    %c0_11 = arith.constant 0 : index
    %c0_12 = arith.constant 0 : index
    %21 = vector.load %arg5[%c0_11, %c0_12] : memref<8x1xf32, #tpu.memory_space<vmem>>, vector<8x1xf32>
    tpu.vector_store %arg5[%c0_11, %c0_12], %9 {strides = array<i32>} : memref<8x1xf32, #tpu.memory_space<vmem>>, vector<8x1xf32>,
    %c128_i32 = arith.constant 128 : i32
    %22 = arith.muli %arg1, %c128_i32 : i32
    %23 = vector.broadcast %22 : i32 to vector<8x1xi32>
    %24 = arith.subi %4, %23 : vector<8x1xi32>
    %25 = vector.broadcast %24 : vector<8x1xi32> to vector<8x128xi32>
    %26 = arith.cmpi eq, %5, %25 : vector<8x128xi32>
    %c0_13 = arith.constant 0 : index
    %c0_14 = arith.constant 0 : index
    %27 = vector.load %arg7[%c0_13, %c0_14] : memref<8x1xf32, #tpu.memory_space<vmem>>, vector<8x1xf32>
    %cst_15 = arith.constant 0.000000e+00 : f32
    %28 = vector.broadcast %cst_15 : f32 to vector<8x128xf32>
    %29 = arith.select %26, %3, %28 : vector<8x128xi1>, vector<8x128xf32>
    %cst_16 = arith.constant dense<0.000000e+00> : vector<8xf32>
    %30 = vector.multi_reduction <add>, %29, %cst_16 [1] : vector<8x128xf32> to vector<8xf32>
    %31 = vector.shape_cast %30 : vector<8xf32> to vector<8x1xf32>
    %32 = arith.addf %27, %31 : vector<8x1xf32>
    %c0_17 = arith.constant 0 : index
    %c0_18 = arith.constant 0 : index
    %33 = vector.load %arg7[%c0_17, %c0_18] : memref<8x1xf32, #tpu.memory_space<vmem>>, vector<8x1xf32>
    tpu.vector_store %arg7[%c0_17, %c0_18], %32 {strides = array<i32>} : memref<8x1xf32, #tpu.memory_space<vmem>>, vector<8x1xf32>,
    %c0_i32_19 = arith.constant 0 : i32
    %34 = arith.cmpi eq, %arg1, %c0_i32_19 : i32
    %35 = arith.extui %34 : i1 to i32
    %c0_i32_20 = arith.constant 0 : i32
    %36 = arith.cmpi ne, %35, %c0_i32_20 : i32
    scf.if %36 {
      %c0_21 = arith.constant 0 : index
      %c0_22 = arith.constant 0 : index
      %37 = vector.load %arg5[%c0_21, %c0_22] : memref<8x1xf32, #tpu.memory_space<vmem>>, vector<8x1xf32>
      %c0_23 = arith.constant 0 : index
      %c0_24 = arith.constant 0 : index
      %38 = vector.load %arg6[%c0_23, %c0_24] : memref<8x1xf32, #tpu.memory_space<vmem>>, vector<8x1xf32>
      %39 = math.log %38 : vector<8x1xf32>
      %40 = arith.addf %37, %39 : vector<8x1xf32>
      %c0_25 = arith.constant 0 : index
      %c0_26 = arith.constant 0 : index
      %41 = vector.load %arg7[%c0_25, %c0_26] : memref<8x1xf32, #tpu.memory_space<vmem>>, vector<8x1xf32>
      %42 = arith.subf %40, %41 : vector<8x1xf32>
      %43 = tpu.iota {dimensions = array<i32: 0>} : vector<8x1xi32>
      %c8_i32 = arith.constant 8 : i32
      %44 = arith.muli %arg0, %c8_i32 : i32
      %45 = vector.broadcast %44 : i32 to vector<8x1xi32>
      %46 = arith.addi %43, %45 : vector<8x1xi32>
      %c16_i32 = arith.constant 16 : i32
      %47 = vector.broadcast %c16_i32 : i32 to vector<8x1xi32>
      %48 = arith.cmpi slt, %46, %47 : vector<8x1xi32>
      %cst_27 = arith.constant 0.000000e+00 : f32
      %49 = vector.broadcast %cst_27 : f32 to vector<8x1xf32>
      %50 = arith.select %48, %42, %49 : vector<8x1xi1>, vector<8x1xf32>
      %c0_28 = arith.constant 0 : index
      %c0_29 = arith.constant 0 : index
      %51 = vector.load %arg4[%c0_28, %c0_29] : memref<8x1xf32, #tpu.memory_space<vmem>>, vector<8x1xf32>
      tpu.vector_store %arg4[%c0_28, %c0_29], %50 {strides = array<i32>} : memref<8x1xf32, #tpu.memory_space<vmem>>, vector<8x1xf32>,
    } else {
    }
    return
  }
  func.func @transform_0(%arg0: i32, %arg1: i32) -> (i32, i32) {
    %c0_i32 = arith.constant 0 : i32
    return %arg0, %arg1 : i32, i32
  }
  func.func @transform_1(%arg0: i32, %arg1: i32) -> (i32, i32) {
    %c0_i32 = arith.constant 0 : i32
    %c0_i32_0 = arith.constant 0 : i32
    return %arg0, %c0_i32 : i32, i32
  }
  func.func @transform_2(%arg0: i32, %arg1: i32) -> (i32, i32) {
    %c0_i32 = arith.constant 0 : i32
    %c0_i32_0 = arith.constant 0 : i32
    return %arg0, %c0_i32 : i32, i32
  }
}

</mosaic_0001>

<bundles_post_ra>
// kernel: tpu_custom_call.1
= control target key start
LH: loop header
LB: loop body
LE: loop exit
PB: predicated region body
PF: predicated region fallthrough
CT: control target
= control target key end

     0   :  { %s409_s9 = smov 0   ;;  %s411_s10 = smov 0   ;;  %s462_s0 = inlined_call_operand.vmem [shape: f32[16,128], index: 0, kind: input, shape index: {}]   ;;  %s463_s1 = inlined_call_operand.vmem [shape: s32[16,1], index: 1, kind: input, shape index: {}]   ;;  %s464_s2 = inlined_call_operand.vmem [shape: f32[16,1], index: 2, kind: output, shape index: {}]  }
   0x1   :  { %s413_s11 = smov 0  }
   0x2 LB: > { %s24_s12 = sadd.s32 1, %s385_s10  ;;  %p325_p0 = scmp.ge.s32.totalorder %s389_s11, 1  ;;  %s389_s11 = sphi %s413_s11, %s12_s11   ;;  %s385_s10 = sphi %s411_s10, %s466_s10   ;;  %s381_s9 = sphi %s409_s9, %s465_s9  }
   0x3   : > { %p26_p1 = scmp.ge.s32.totalorder %s24_s12, 2  ;;  %p137_p2 = scmp.lt.s32.totalorder %s389_s11, 3 }
   0x5   : > { %s468_s12 = smov (%p26_p1, %s24_s12), 0  ;;  %p138_p3 = pnand %p325_p0, %p137_p2 }
   0x6   : > { %p164_p4 = scmp.lt.s32.totalorder (!%p138_p3), %s381_s9, 1  ;;  %s329_s21 = sshll.u32 (!%p138_p3), %s381_s9, 3 }
   0x7   : > { %141 = sbr.rel (%p138_p3) target bundleno = 469 (0x1d5), region = 28 }
   0xc   : > { %vm183_vm0 = vcmask 7168   ;;  %v391_v0 = vmov -inf   ;;  %s165_s13 = scalar_select %p164_p4, %s381_s9, 1  ;;  %v392_v2 = vmov 0   ;;  %v393_v4 = vmov 0.0  }
   0xd   : > { %184 = vst.msk [vmem:[#allocation2] sm:$0xff] %vm183_vm0, %v391_v0  ;;  %359 = vset.pattern.permute.xlu0 %v392_v2  ;;  %360 = vset.pattern.permute.xlu1 %v392_v2  ;;  %185 = vst.msk [vmem:[#allocation3] sm:$0xff] %vm183_vm0, %v393_v4  ;;  %v189_v12 = vlaneseq  ;;  %v240_v28 = vstv %s329_s21 }
   0xe   : > { %s432_s14 = sshll.u32 %s165_s13, 3  ;;  %186 = vst.msk [vmem:[#allocation4] sm:$0xff] %vm183_vm0, %v393_v4 }
   0xf   : > { %s170_s17 = scalar_lea.vmem %s462_s0, %s432_s14  ;;  %s174_s20 = scalar_lea.vmem %s463_s1, %s432_s14  ;;  %v190_v13 = vand.u32 127, %v189_v12  ;;  %v238_v27 = vshrl.u32 %v189_v12, 7 }
  0x10   : > { %v187_v1 = vld [vmem:[%s170_s17] sm:$0xff]  ;;  %s178_s24 = scalar_lea.vmem %s464_s2, %s432_s14 }
  0x11   : > { %192 = vmax.xlane.f32.xlu0 %v187_v1  ;;  %v188_v3 = vld [vmem:[%s174_s20] sm:$0xff]  ;;  %v241_v30 = vadd.s32 %v240_v28, %v238_v27 }
  0x12   : > { %218 = vperm.xlu1 %360, %v188_v3  }
  0x13   : > { %vm242_vm2 = vcmp.lt.s32.totalorder %v241_v30, 16 }
  0x14   : > { %v191_v5 = vld [vmem:[#allocation2] sm:$0xff]  ;;  %v195_v19 = vld [vmem:[#allocation3] sm:$0xff] }
  0x15   : > { %v221_v23 = vld [vmem:[#allocation4] sm:$0xff] }
  0x8d   : > { %v219_v14 = vpop.permute.xlu1 %218 }
  0x8e   : > { %vm220_vm1 = vcmp.eq.s32.totalorder %v190_v13, %v219_v14 }
  0x8f   : > { %v222_v16 = vsel %vm220_vm1, %v187_v1, 0.0 }
  0x9a   : > { %v193_v6 = vpop.xlane.xlu0 %192 }
  0x9b   : > { %v194_v7 = vmax.f32 %v191_v5, %v193_v6 }
  0x9d   : > { %v196_v8 = vsub.f32 %v191_v5, %v194_v7  ;;  %213 = vst.msk [vmem:[#allocation2] sm:$0xff] %vm183_vm0, %v194_v7  ;;  %202 = vperm.xlu0 %359, %v194_v7  }
  0x9f   : > { %v197_v17 = vmul.f32 1.442695, %v196_v8 }
  0xa4   : > { %v230_v32 = vld [vmem:[#allocation2] sm:$0xff] }
 0x118   : > { %v203_v9 = vpop.permute.xlu0 %202 }
 0x119   : > { %v205_v10 = vsub.f32 %v187_v1, %v203_v9 }
 0x11b   : > { %v206_v11 = vmul.f32 1.442695, %v205_v10 }
 0x11d   : > { %361 = vpow2.f32 %v206_v11 }
 0x11e   : > { %363 = vpow2.f32 %v197_v17 }
 0x12a   : > { %v362_v15 = vpop.eup %361 }
 0x12b   : > { %208 = vadd.xlane.f32.xlu1 %v362_v15  ;;  %v364_v18 = vpop.eup %363 }
 0x12c   : > { %v199_v20 = vmul.f32 %v364_v18, %v195_v19 }
 0x12f   : > { %223 = vadd.xlane.f32.xlu1 %v222_v16 }
 0x1b4   : > { %v209_v21 = vpop.xlane.xlu1 %208 }
 0x1b5   : > { %v210_v22 = vadd.f32 %v209_v21, %v199_v20 }
 0x1b7   : > { %212 = vst.msk [vmem:[#allocation3] sm:$0xff] %vm183_vm0, %v210_v22 }
 0x1b8   : > { %v224_v24 = vpop.xlane.xlu1 %223 }
 0x1b9   : > { %v225_v25 = vadd.f32 %v224_v24, %v221_v23 }
 0x1bb   : > { %226 = vst.msk [vmem:[#allocation4] sm:$0xff] %vm183_vm0, %v225_v25 }
 0x1be   : > { %v231_v26 = vld [vmem:[#allocation3] sm:$0xff] }
 0x1bf   : > { %365 = vlog2.f32 %v231_v26 }
 0x1c2   : > { %v235_v33 = vld [vmem:[#allocation4] sm:$0xff] }
 0x1cc   : > { %v366_v29 = vpop.eup %365 }
 0x1cd   : > { %v233_v31 = vmul.f32 0.6931472, %v366_v29 }
 0x1cf   : > { %v234_v34 = vadd.f32 %v233_v31, %v230_v32 }
 0x1d1   : > { %v236_v35 = vsub.f32 %v234_v34, %v235_v33 }
 0x1d3   : > { %v243_v36 = vsel %vm242_vm2, %v236_v35, 0.0 }
 0x1d4   : > { %244 = vst.msk [vmem:[%s178_s24] sm:$0xff] %vm183_vm0, %v243_v36 }
 0x1d5 PF: > { %s12_s11 = sadd.s32 1, %s389_s11   ;;  %s465_s9 = smov %s385_s10 }
 0x1d6   : > { %p9_p5 = scmp.ge.s32.totalorder %s12_s11, 4   ;;  %s466_s10 = smov %s468_s12 }
 0x1d8   :  { %11 = sbr.rel (!%p9_p5) target bundleno = 2 (0x2), region = 69 }

</bundles_post_ra>
